<compile_context>
chip_gen: v5e
topology: v5e:2x2
jax: 0.10.0
libtpu: 0.0.40
codegen_flags: <defaults>
</compile_context>

<pallas_src>
import jax
import jax.numpy as jnp
from jax import lax
from jax.experimental import pallas as pl
from jax.experimental.pallas import tpu as pltpu


# ----------------------------------------------------------------------------
# Kernels
# ----------------------------------------------------------------------------
def _make_fused_kernel(eps):
    """Single-pass BN (stats + normalize) with x fully resident in VMEM."""
    def kernel(x_ref, gamma_ref, beta_ref, o_ref, mean_ref, var_ref):
        x = x_ref[...].astype(jnp.float32)                       # (n, c, hw)
        n, _, hw = x.shape
        m = float(n * hw)
        denom = float(max(n * hw - 1, 1))                        # unbiased; guard m==1
        # Per-channel sums: VPU adds over batch dim, one XLU lane reduce.
        s = jnp.sum(jnp.sum(x, axis=0), axis=-1, keepdims=True)  # (c, 1)
        mean = s / m
        xc = x - mean[None, :, :]
        ssq = jnp.sum(jnp.sum(xc * xc, axis=0), axis=-1, keepdims=True)
        var = ssq / denom                                        # centred -> accurate
        scale = gamma_ref[...] * lax.rsqrt(var + eps)            # (c, 1)
        shift = beta_ref[...] - mean * scale
        o_ref[...] = (x * scale[None, :, :] + shift[None, :, :]).astype(o_ref.dtype)
        mean_ref[...] = mean
        var_ref[...] = var
    return kernel


def _stats_kernel(x_ref, out_ref, sum_sc, sumsq_sc):
    """Per-row (= per (n, c) pair) sum / sum-of-squares, packed into (rb, 2)."""
    j = pl.program_id(1)                                         # hw-tile (reduction)

    @pl.when(j == 0)
    def _init():
        sum_sc[...] = jnp.zeros_like(sum_sc)
        sumsq_sc[...] = jnp.zeros_like(sumsq_sc)

    xb = x_ref[...].astype(jnp.float32)                          # (rb, t)
    sum_sc[...] += xb
    sumsq_sc[...] += xb * xb

    @pl.when(j == pl.num_programs(1) - 1)
    def _fin():
        # Single cross-lane (XLU) reduction per row block; both stats in one output.
        out_ref[:, 0:1] = jnp.sum(sum_sc[...], axis=-1, keepdims=True)
        out_ref[:, 1:2] = jnp.sum(sumsq_sc[...], axis=-1, keepdims=True)


def _norm_kernel(x_ref, scale_ref, shift_ref, o_ref):
    """y = x * scale + shift with per-row (folded) scale/shift."""
    x = x_ref[...].astype(jnp.float32)
    o_ref[...] = (x * scale_ref[...] + shift_ref[...]).astype(o_ref.dtype)


# ----------------------------------------------------------------------------
# Sizing helpers (generation-aware)
# ----------------------------------------------------------------------------
def _round_up(a, b):
    return (a + b - 1) // b * b


def _largest_divisor(total, step, cap):
    """Largest multiple of `step` dividing `total`, <= cap (step | total, cap >= step)."""
    t = min(total, (cap // step) * step)
    while t > step and total % t != 0:
        t -= step
    return max(step, t)


def _vmem_capacity_bytes():
    try:
        return int(pltpu.get_tpu_info().vmem_capacity_bytes)
    except Exception:
        return 64 * 1024 * 1024            # conservative fallback (v7x per-TensorCore)


def _vmem_limit_bytes():
    cap = _vmem_capacity_bytes()
    if cap >= 128 * 1024 * 1024:           # v5e / v6e: 128 MiB physical VMEM
        return 100 * 1024 * 1024
    # v7x: 64 MiB per TensorCore -> leave headroom for Mosaic internal scratch.
    return max(8 * 1024 * 1024, min(44 * 1024 * 1024, cap - 20 * 1024 * 1024))


def _plan_tiles_2d(r, hw, itemsize, target_bytes, sub_pack):
    """Pick a (rb, t) block over a (pad_r, pad_hw) view of the (r, hw) tensor."""
    # Lane (spatial) axis.
    if hw % 128 == 0:
        pad_hw = hw
        max_t = max(128, (target_bytes // max(1, sub_pack * itemsize)) // 128 * 128)
        t = _largest_divisor(hw, 128, min(hw, max_t))
    elif hw * sub_pack * itemsize <= target_bytes:
        pad_hw = hw
        t = hw                             # full-extent lane block (legal, no padding)
    else:
        # Rare: huge non-128-multiple spatial extent -> zero-pad lanes in the wrapper.
        # TODO(synk): could instead mask the ragged tail in-kernel to avoid the pad pass.
        pad_hw = _round_up(hw, 128)
        max_t = max(128, (target_bytes // max(1, sub_pack * itemsize)) // 128 * 128)
        t = _largest_divisor(pad_hw, 128, min(pad_hw, max_t))

    # Row axis (flattened (n, c) pairs).  If the lane tile is forced small by awkward
    # H*W factors, rb grows so the block stays near the budget (no tiny-block trap).
    row_bytes = t * itemsize
    rb_cap = max(sub_pack, (target_bytes // row_bytes) // sub_pack * sub_pack)
    if r >= 2 * sub_pack:
        half = max(sub_pack, (r // 2) // sub_pack * sub_pack)
        # Keep >= 2 row blocks (v7x dual TensorCore) unless blocks would get tiny.
        if half * row_bytes >= (2 << 20):
            rb_cap = min(rb_cap, half)

    pad_r = r
    if r <= sub_pack:
        rb = r                             # full-extent rows
    elif r % sub_pack == 0:
        rb = _largest_divisor(r, sub_pack, min(r, rb_cap))
    elif r * row_bytes <= target_bytes:
        rb = r                             # full-extent rows fit in one block
    else:
        pad_r = _round_up(r, sub_pack)     # rare fallback: zero-pad rows
        rb = _largest_divisor(pad_r, sub_pack, min(pad_r, rb_cap))
    return rb, t, pad_r, pad_hw


# ----------------------------------------------------------------------------
# Forward wrapper
# ----------------------------------------------------------------------------
def bn2d_reimplemented_forward(x_nchw, gamma, beta, running_mean, running_var,
                               *, alpha=0.9, eps=1e-5, training=True,
                               force_two_pass=False):
    """Pallas forward of BN2dReimplemented.

    Returns (bn, new_running_mean, new_running_var) -- running stats are returned
    (JAX is functional) rather than mutated in place.
    """
    n, c, h, w = x_nchw.shape
    hw = h * w
    dtype = x_nchw.dtype
    itemsize = jnp.dtype(dtype).itemsize
    sub_pack = max(8, 32 // itemsize)      # sublane pack: 8 f32, 16 bf16, 32 int8

    vmem_limit = _vmem_limit_bytes()
    # Per-block budget: double-buffered in/out blocks + f32 scratch/temporaries all fit.
    target_bytes = max(1 << 20, vmem_limit // (4 + 16 // itemsize))

    gamma_f = gamma.astype(jnp.float32)
    beta_f = beta.astype(jnp.float32)

    # ------------------ fused single-pass fast path (training) ------------------
    c_pad = _round_up(c, sub_pack)
    hw_pad = _round_up(hw, 128)
    fused_bytes = n * c_pad * hw_pad * (2 * itemsize + 3 * 4)    # in/out + f32 temps
    if training and not force_two_pass and fused_bytes <= vmem_limit - (4 << 20):
        x3 = x_nchw.reshape(n, c, hw)                            # free reshape
        bn3, mean2, var2 = pl.pallas_call(
            _make_fused_kernel(float(eps)),
            out_shape=(jax.ShapeDtypeStruct((n, c, hw), dtype),
                       jax.ShapeDtypeStruct((c, 1), jnp.float32),
                       jax.ShapeDtypeStruct((c, 1), jnp.float32)),
            compiler_params=pltpu.CompilerParams(vmem_limit_bytes=vmem_limit),
        )(x3, gamma_f.reshape(c, 1), beta_f.reshape(c, 1))
        mean, var = mean2[:, 0], var2[:, 0]
        new_rm = alpha * running_mean + (1.0 - alpha) * mean
        new_rv = alpha * running_var + (1.0 - alpha) * var
        return bn3.reshape(n, c, h, w), new_rm, new_rv

    # ------------------------------ two-pass path --------------------------------
    r = n * c
    rb, t, pad_r, pad_hw2 = _plan_tiles_2d(r, hw, itemsize, target_bytes, sub_pack)
    x2 = x_nchw.reshape(r, hw)                                   # free reshape
    padded = (pad_r != r) or (pad_hw2 != hw)
    if padded:
        # Rare fallback (extra HBM pass); zero padding keeps sums exact.
        x2 = jnp.pad(x2, ((0, pad_r - r), (0, pad_hw2 - hw)))
    g0 = pad_r // rb
    g1 = pad_hw2 // t

    if training:
        row_stats = pl.pallas_call(
            _stats_kernel,
            out_shape=jax.ShapeDtypeStruct((pad_r, 2), jnp.float32),
            grid_spec=pltpu.PrefetchScalarGridSpec(
                num_scalar_prefetch=0,
                grid=(g0, g1),
                in_specs=[pl.BlockSpec((rb, t), lambda i, j: (i, j))],
                out_specs=pl.BlockSpec((rb, 2), lambda i, j: (i, 0)),
                scratch_shapes=[pltpu.VMEM((rb, t), jnp.float32),
                                pltpu.VMEM((rb, t), jnp.float32)],
            ),
            compiler_params=pltpu.CompilerParams(
                dimension_semantics=("parallel", "arbitrary"),
                vmem_limit_bytes=vmem_limit),
        )(x2)
        m = jnp.float32(n * hw)
        denom = jnp.float32(max(n * hw - 1, 1))                  # guard n*h*w == 1
        total_sum = jnp.sum(row_stats[:r, 0].reshape(n, c), axis=0)
        total_sumsq = jnp.sum(row_stats[:r, 1].reshape(n, c), axis=0)
        mean = total_sum / m
        # Unbiased variance (matches torch.var(..., unbiased=True)).
        # TODO(synk): one-pass sumsq - m*mean^2 can cancel for huge N*H*W with large
        # |mean|/std; the fused path uses exact centred variance instead.
        var = (total_sumsq - m * mean * mean) / denom
        new_rm = alpha * running_mean + (1.0 - alpha) * mean
        new_rv = alpha * running_var + (1.0 - alpha) * var
    else:
        mean = running_mean.astype(jnp.float32)
        var = running_var.astype(jnp.float32)
        new_rm, new_rv = running_mean, running_var

    # Fold gamma/beta/mean/var into one per-row FMA (tiny C / N*C length host ops).
    scale_c = gamma_f / jnp.sqrt(var + eps)
    shift_c = beta_f - mean * scale_c
    scale_r = jnp.tile(scale_c, n)
    shift_r = jnp.tile(shift_c, n)
    if pad_r != r:
        scale_r = jnp.pad(scale_r, (0, pad_r - r))
        shift_r = jnp.pad(shift_r, (0, pad_r - r))
    scale_r = scale_r.reshape(pad_r, 1)
    shift_r = shift_r.reshape(pad_r, 1)

    bn2 = pl.pallas_call(
        _norm_kernel,
        out_shape=jax.ShapeDtypeStruct((pad_r, pad_hw2), dtype),
        grid_spec=pltpu.PrefetchScalarGridSpec(
            num_scalar_prefetch=0,
            grid=(g0, g1),
            in_specs=[pl.BlockSpec((rb, t), lambda i, j: (i, j)),
                      pl.BlockSpec((rb, 1), lambda i, j: (i, 0)),
                      pl.BlockSpec((rb, 1), lambda i, j: (i, 0))],
            out_specs=pl.BlockSpec((rb, t), lambda i, j: (i, j)),
        ),
        compiler_params=pltpu.CompilerParams(
            dimension_semantics=("parallel", "parallel"),
            vmem_limit_bytes=vmem_limit),
    )(x2, scale_r, shift_r)
    if padded:
        bn2 = bn2[:r, :hw]
    return bn2.reshape(n, c, h, w), new_rm, new_rv


# ----------------------------------------------------------------------------
# Pure-JAX reference (mirrors the PyTorch forward)
# ----------------------------------------------------------------------------
def _reference(x_nchw, gamma, beta, running_mean, running_var, alpha=0.9, eps=1e-5):
    n, c, h, w = x_nchw.shape
    x2d = jnp.transpose(x_nchw, (0, 2, 3, 1)).reshape(-1, c)
    mean = jnp.mean(x2d, axis=0)
    var = jnp.var(x2d, axis=0, ddof=1)                            # unbiased
    bn = (gamma.reshape(1, c, 1, 1) * (x_nchw - mean.reshape(1, c, 1, 1))
          / jnp.sqrt(var.reshape(1, c, 1, 1) + eps) + beta.reshape(1, c, 1, 1))
    new_rm = alpha * running_mean + (1.0 - alpha) * mean
    new_rv = alpha * running_var + (1.0 - alpha) * var
    return bn, new_rm, new_rv


if __name__ == "__main__":
    key = jax.random.PRNGKey(0)
    N, C, H, W = 2, 4, 16, 16                                     # NumFeatures = C = 4

    x = jax.random.normal(key, (N, C, H, W), dtype=jnp.float32) * 2.0 + 0.5

    # Deterministic parameter init (matches nn.Parameter zeros/ones in __init__).
    beta = jnp.zeros((C,), dtype=jnp.float32)
    gamma = jnp.ones((C,), dtype=jnp.float32)
    running_mean = jnp.zeros((C,), dtype=jnp.float32)
    running_var = jnp.ones((C,), dtype=jnp.float32)

    bn_ref, rm_ref, rv_ref = _reference(x, gamma, beta, running_mean, running_var)

    # Training: fused single-pass path (whole tensor fits in VMEM).
    bn, new_rm, new_rv = bn2d_reimplemented_forward(
        x, gamma, beta, running_mean, running_var, training=True)
    jax.block_until_ready((bn, new_rm, new_rv))
    assert bn.shape == (N, C, H, W)
    assert jnp.allclose(bn, bn_ref, atol=1e-4, rtol=1e-4)
    assert jnp.allclose(new_rm, rm_ref, atol=1e-5, rtol=1e-5)
    assert jnp.allclose(new_rv, rv_ref, atol=1e-5, rtol=1e-5)

    # Training: forced two-pass (stats + norm) path, to exercise the tiled kernels.
    bn2p, rm2p, rv2p = bn2d_reimplemented_forward(
        x, gamma, beta, running_mean, running_var, training=True, force_two_pass=True)
    jax.block_until_ready(bn2p)
    assert jnp.allclose(bn2p, bn_ref, atol=1e-4, rtol=1e-4)
    assert jnp.allclose(rm2p, rm_ref, atol=1e-4, rtol=1e-4)
    assert jnp.allclose(rv2p, rv_ref, atol=1e-4, rtol=1e-4)

    # Eval: uses running stats (rm=0, rv=1 -> identity up to eps).
    bn_eval, _, _ = bn2d_reimplemented_forward(
        x, gamma, beta, running_mean, running_var, training=False)
    jax.block_until_ready(bn_eval)
    bn_eval_ref = (gamma.reshape(1, C, 1, 1)
                   * (x - running_mean.reshape(1, C, 1, 1))
                   / jnp.sqrt(running_var.reshape(1, C, 1, 1) + 1e-5)
                   + beta.reshape(1, C, 1, 1))
    assert jnp.allclose(bn_eval, bn_eval_ref, atol=1e-5, rtol=1e-5)

    print("KERNEL_OK")
</pallas_src>

<mosaic_0001>
module attributes {stable_mosaic.version = 11 : i64} {
  func.func @kernel(%arg0: memref<2x4x256xf32, #tpu.memory_space<vmem>>, %arg1: memref<4x1xf32, #tpu.memory_space<vmem>>, %arg2: memref<4x1xf32, #tpu.memory_space<vmem>>, %arg3: memref<2x4x256xf32, #tpu.memory_space<vmem>>, %arg4: memref<4x1xf32, #tpu.memory_space<vmem>>, %arg5: memref<4x1xf32, #tpu.memory_space<vmem>>) attributes {dimension_semantics = [], scalar_prefetch = 0 : i64, scratch_operands = 0 : i64, tpu.core_type = #tpu.core_type<tc>} {
    %c0 = arith.constant 0 : index
    %c0_0 = arith.constant 0 : index
    %c0_1 = arith.constant 0 : index
    %0 = vector.load %arg0[%c0, %c0_0, %c0_1] : memref<2x4x256xf32, #tpu.memory_space<vmem>>, vector<2x4x256xf32>
    %cst = arith.constant dense<0.000000e+00> : vector<4x256xf32>
    %1 = vector.multi_reduction <add>, %0, %cst [0] : vector<2x4x256xf32> to vector<4x256xf32>
    %cst_2 = arith.constant dense<0.000000e+00> : vector<4xf32>
    %2 = vector.multi_reduction <add>, %1, %cst_2 [1] : vector<4x256xf32> to vector<4xf32>
    %3 = vector.shape_cast %2 : vector<4xf32> to vector<4x1xf32>
    %cst_3 = arith.constant 5.120000e+02 : f32
    %4 = vector.broadcast %cst_3 : f32 to vector<4x1xf32>
    %5 = arith.divf %3, %4 : vector<4x1xf32>
    %6 = vector.shape_cast %5 : vector<4x1xf32> to vector<1x4x1xf32>
    %7 = vector.broadcast %6 : vector<1x4x1xf32> to vector<2x4x256xf32>
    %8 = arith.subf %0, %7 : vector<2x4x256xf32>
    %9 = arith.mulf %8, %8 : vector<2x4x256xf32>
    %cst_4 = arith.constant dense<0.000000e+00> : vector<4x256xf32>
    %10 = vector.multi_reduction <add>, %9, %cst_4 [0] : vector<2x4x256xf32> to vector<4x256xf32>
    %cst_5 = arith.constant dense<0.000000e+00> : vector<4xf32>
    %11 = vector.multi_reduction <add>, %10, %cst_5 [1] : vector<4x256xf32> to vector<4xf32>
    %12 = vector.shape_cast %11 : vector<4xf32> to vector<4x1xf32>
    %cst_6 = arith.constant 5.110000e+02 : f32
    %13 = vector.broadcast %cst_6 : f32 to vector<4x1xf32>
    %14 = arith.divf %12, %13 : vector<4x1xf32>
    %c0_7 = arith.constant 0 : index
    %c0_8 = arith.constant 0 : index
    %15 = vector.load %arg1[%c0_7, %c0_8] : memref<4x1xf32, #tpu.memory_space<vmem>>, vector<4x1xf32>
    %cst_9 = arith.constant 9.99999974E-6 : f32
    %16 = vector.broadcast %cst_9 : f32 to vector<4x1xf32>
    %17 = arith.addf %14, %16 : vector<4x1xf32>
    %18 = math.rsqrt %17 : vector<4x1xf32>
    %19 = arith.mulf %15, %18 : vector<4x1xf32>
    %c0_10 = arith.constant 0 : index
    %c0_11 = arith.constant 0 : index
    %20 = vector.load %arg2[%c0_10, %c0_11] : memref<4x1xf32, #tpu.memory_space<vmem>>, vector<4x1xf32>
    %21 = arith.mulf %5, %19 : vector<4x1xf32>
    %22 = arith.subf %20, %21 : vector<4x1xf32>
    %23 = vector.shape_cast %19 : vector<4x1xf32> to vector<1x4x1xf32>
    %24 = vector.broadcast %23 : vector<1x4x1xf32> to vector<2x4x256xf32>
    %25 = arith.mulf %0, %24 : vector<2x4x256xf32>
    %26 = vector.shape_cast %22 : vector<4x1xf32> to vector<1x4x1xf32>
    %27 = vector.broadcast %26 : vector<1x4x1xf32> to vector<2x4x256xf32>
    %28 = arith.addf %25, %27 : vector<2x4x256xf32>
    %c0_12 = arith.constant 0 : index
    %c0_13 = arith.constant 0 : index
    %c0_14 = arith.constant 0 : index
    %29 = vector.load %arg3[%c0_12, %c0_13, %c0_14] : memref<2x4x256xf32, #tpu.memory_space<vmem>>, vector<2x4x256xf32>
    tpu.vector_store %arg3[%c0_12, %c0_13, %c0_14], %28 {strides = array<i32>} : memref<2x4x256xf32, #tpu.memory_space<vmem>>, vector<2x4x256xf32>,
    %c0_15 = arith.constant 0 : index
    %c0_16 = arith.constant 0 : index
    %30 = vector.load %arg4[%c0_15, %c0_16] : memref<4x1xf32, #tpu.memory_space<vmem>>, vector<4x1xf32>
    tpu.vector_store %arg4[%c0_15, %c0_16], %5 {strides = array<i32>} : memref<4x1xf32, #tpu.memory_space<vmem>>, vector<4x1xf32>,
    %c0_17 = arith.constant 0 : index
    %c0_18 = arith.constant 0 : index
    %31 = vector.load %arg5[%c0_17, %c0_18] : memref<4x1xf32, #tpu.memory_space<vmem>>, vector<4x1xf32>
    tpu.vector_store %arg5[%c0_17, %c0_18], %14 {strides = array<i32>} : memref<4x1xf32, #tpu.memory_space<vmem>>, vector<4x1xf32>,
    return
  }
}

</mosaic_0001>

<bundles_post_ra>
// kernel: tpu_custom_call.1
= control target key start
LH: loop header
LB: loop body
LE: loop exit
PB: predicated region body
PF: predicated region fallthrough
CT: control target
= control target key end

     0   :  { %11 = vsyncpa [#allocation3], 0  ;;  %s340_s0 = inlined_call_operand.hbm [shape: f32[2,4,256], index: 0, kind: input, shape index: {}]   ;;  %s341_s1 = inlined_call_operand.vmem [shape: f32[4,1], index: 1, kind: input, shape index: {}]   ;;  %s342_s2 = inlined_call_operand.vmem [shape: f32[4,1], index: 2, kind: input, shape index: {}]   ;;  %s343_s3 = inlined_call_operand.hbm [shape: f32[2,4,256], index: 3, kind: output, shape index: {0}]   ;;  %s344_s4 = inlined_call_operand.vmem [shape: f32[4,1], index: 4, kind: output, shape index: {1}]   ;;  %s345_s5 = inlined_call_operand.vmem [shape: f32[4,1], index: 5, kind: output, shape index: {2}]  }
   0x1   :  { %12 = vsyncpa [#allocation4], 0  ;;  %s17_s20 = sshll.u32 %s340_s0, 4  ;;  %s249_s21 = smov [#allocation2]   ;;  %s18_s20 = int_to_ptr.hbm [resolvable:$true] %s17_s20 }
   0x2   :  { %s19_s22 = sshll.u32 %s249_s21, 4  ;;  %s250_s23 = smov 128   ;;  %s20_s22 = int_to_ptr.vmem [resolvable:$true] %s19_s22 }
   0x3   :  { %s251_s24 = smov 8  }
   0x4   :  { %25 = dma.hbm_to_vmem [thread:$0]  %s18_s20, 256, %s20_s22, [#allocation3], %s250_s23, %s250_s23, %s251_s24  }
   0x5   :  { %245 = dma.done.wait [#allocation3], 256  }
   0x6   :  { %246 = vsyncadd [#allocation3], 4294967040  ;;  %v293_v0 = vld [vmem:[#allocation2] sm:$0xff]  ;;  %v295_v1 = vld [vmem:[#allocation2 + $0x8] sm:$0xff]  ;;  %vm49_vm0 = vcmask 1043456   ;;  %v252_v15 = vmov 512.0  }
   0x7   :  { %38 = vst [vmem:[#allocation1] ss:$2 sm:$0xff] %v293_v0  ;;  %191 = vrcp.f32 %v252_v15  ;;  %v253_v21 = vmov 839922192   ;;  %vm151_vm2 = vcmask 3072   ;;  %v254_v45 = vmov 511.0  }
   0x8   :  { %42 = vst [vmem:[#allocation1 + $0x10] ss:$2 sm:$0xff] %v295_v1  ;;  %v71_v22 = vunpack.c.l.s4 %v253_v21  ;;  %193 = vrcp.f32 %v254_v45  ;;  %v255_v48 = vmov 0   ;;  %v111_v61 = vld [vmem:[%s341_s1] sm:$0xf]  ;;  %s256_s1 = smov [#allocation5]  }
   0x9   :  { %189 = vset.pattern.permute.xlu1 %v255_v48  ;;  %190 = vset.pattern.permute.xlu0 %v255_v48  ;;  %s158_s30 = sshll.u32 %s256_s1, 4  ;;  %s160_s8 = sshll.u32 %s343_s3, 4  ;;  %s159_s30 = int_to_ptr.vmem [resolvable:$true] %s158_s30  ;;  %s161_s8 = int_to_ptr.hbm [resolvable:$true] %s160_s8 }
   0xa   :  { %v305_v24 = vunpack.c.0.s8 %v71_v22 }
   0xd   :  { %v192_v16 = vpop.eup %191 }
   0xe   :  { %v39_v2 = vld.sshfl [vmem:[#allocation1] sm:$0xff pattern:$0x75316420]  ;;  %v40_v3 = vld.sshfl [vmem:[#allocation1 + $0x8] sm:$0xff pattern:$0x75316420]  ;;  %vm66_vm1 = vweird.f32 %v192_v16  ;;  %v194_v46 = vpop.eup %193 }
   0xf   :  { %v43_v4 = vld.sshfl [vmem:[#allocation1 + $0x10] sm:$0xff pattern:$0x75316420]  ;;  %v44_v5 = vld.sshfl [vmem:[#allocation1 + $0x18] sm:$0xff pattern:$0x75316420]  ;;  %vm108_vm3 = vweird.f32 %v194_v46 }
  0x10   :  { %v50_v6 = vsel %vm49_vm0, %v39_v2, 0.0  ;;  %v51_v7 = vsel %vm49_vm0, %v43_v4, 0.0  ;;  %v53_v8 = vsel %vm49_vm0, %v40_v3, 0.0  ;;  %v54_v9 = vsel %vm49_vm0, %v44_v5, 0.0  ;;  %v124_v4 = vld [vmem:[%s342_s2] sm:$0xf] }
  0x11   :  { %v52_v10 = vadd.f32 %v51_v7, %v50_v6  ;;  %v55_v11 = vadd.f32 %v54_v9, %v53_v8  ;;  %v62_v17 = vmul.f32 512.0, %v192_v16  ;;  %v104_v47 = vmul.f32 511.0, %v194_v46 }
  0x13   :  { %v56_v12 = vsel %vm49_vm0, %v52_v10, 0.0  ;;  %v57_v13 = vsel %vm49_vm0, %v55_v11, 0.0  ;;  %v63_v18 = vsub.f32 1.0, %v62_v17  ;;  %v105_v49 = vsub.f32 1.0, %v104_v47 }
  0x14   :  { %v58_v14 = vadd.f32 %v57_v13, %v56_v12 }
  0x15   :  { %v64_v19 = vmul.f32 %v192_v16, %v63_v18  ;;  %v106_v50 = vmul.f32 %v194_v46, %v105_v49 }
  0x16   :  { %59 = vadd.xlane.f32.xlu0 %v58_v14 }
  0x17   :  { %v65_v20 = vadd.f32 %v192_v16, %v64_v19  ;;  %v107_v51 = vadd.f32 %v194_v46, %v106_v50 }
  0x19   :  { %v67_v23 = vsel %vm66_vm1, %v192_v16, %v65_v20  ;;  %v109_v52 = vsel %vm108_vm3, %v194_v46, %v107_v51 }
  0x89   :  { %v60_v25 = vpop.xlane.xlu0 %59 }
  0x8a   :  { %v68_v26 = vmul.f32 %v67_v23, %v60_v25 }
  0x8c   :  { %v73_v27 = vperm.slane %v68_v26, %v305_v24  ;;  %152 = vst.msk [vmem:[%s344_s4] sm:$0xf] %vm151_vm2, %v68_v26 }
  0x8e   :  { %v75_v28 = vsub.f32 %v293_v0, %v73_v27  ;;  %v76_v29 = vsub.f32 %v295_v1, %v73_v27 }
  0x90   :  { %v77_v30 = vmul.f32 %v75_v28, %v75_v28  ;;  %v78_v31 = vmul.f32 %v76_v29, %v76_v29 }
  0x92   :  { %81 = vst [vmem:[#allocation1] ss:$2 sm:$0xff] %v77_v30 }
  0x93   :  { %85 = vst [vmem:[#allocation1 + $0x10] ss:$2 sm:$0xff] %v78_v31 }
  0x99   :  { %v82_v32 = vld.sshfl [vmem:[#allocation1] sm:$0xff pattern:$0x75316420]  ;;  %v83_v33 = vld.sshfl [vmem:[#allocation1 + $0x8] sm:$0xff pattern:$0x75316420] }
  0x9a   :  { %v86_v34 = vld.sshfl [vmem:[#allocation1 + $0x10] sm:$0xff pattern:$0x75316420]  ;;  %v87_v35 = vld.sshfl [vmem:[#allocation1 + $0x18] sm:$0xff pattern:$0x75316420] }
  0x9b   :  { %v92_v36 = vsel %vm49_vm0, %v82_v32, 0.0  ;;  %v93_v37 = vsel %vm49_vm0, %v86_v34, 0.0  ;;  %v95_v38 = vsel %vm49_vm0, %v83_v33, 0.0  ;;  %v96_v39 = vsel %vm49_vm0, %v87_v35, 0.0 }
  0x9c   :  { %v94_v40 = vadd.f32 %v93_v37, %v92_v36  ;;  %v97_v41 = vadd.f32 %v96_v39, %v95_v38 }
  0x9e   :  { %v98_v42 = vsel %vm49_vm0, %v94_v40, 0.0  ;;  %v99_v43 = vsel %vm49_vm0, %v97_v41, 0.0 }
  0x9f   :  { %v100_v44 = vadd.f32 %v99_v43, %v98_v42 }
  0xa1   :  { %101 = vadd.xlane.f32.xlu0 %v100_v44 }
 0x114   :  { %v102_v53 = vpop.xlane.xlu0 %101 }
 0x115   :  { %v110_v54 = vmul.f32 %v109_v52, %v102_v53 }
 0x117   :  { %v112_v55 = vadd.f32 1e-05, %v110_v54  ;;  %153 = vst.msk [vmem:[%s345_s5] sm:$0xf] %vm151_vm2, %v110_v54 }
 0x119   :  { %195 = vrsqrt.f32 %v112_v55  ;;  %vm119_vm5 = vweird.f32 %v112_v55 }
 0x11f   :  { %v196_v56 = vpop.eup %195 }
 0x120   :  { %v114_v57 = vmul.f32 %v196_v56, %v112_v55  ;;  %vm120_vm4 = vweird.f32 %v196_v56 }
 0x121   :  { %vm121_vm6 = vmor %vm119_vm5, %vm120_vm4 }
 0x122   :  { %v115_v58 = vmul.f32 %v196_v56, %v114_v57 }
 0x124   :  { %v116_v59 = vmul.f32 0.5, %v115_v58 }
 0x126   :  { %v117_v60 = vsub.f32 1.5, %v116_v59 }
 0x128   :  { %v118_v62 = vmul.f32 %v196_v56, %v117_v60 }
 0x12a   :  { %v122_v63 = vsel %vm121_vm6, %v196_v56, %v118_v62 }
 0x12b   :  { %v123_v2 = vmul.f32 %v122_v63, %v111_v61 }
 0x12d   :  { %129 = vperm.xlu1 %189, %v123_v2   ;;  %v125_v3 = vmul.f32 %v123_v2, %v68_v26 }
 0x12f   :  { %v126_v5 = vsub.f32 %v124_v4, %v125_v3 }
 0x135   :  { %140 = vperm.xlu1 %189, %v126_v5  }
 0x19f   :  { %v130_v6 = vpop.permute.xlu1 %129 }
 0x1a0   :  { %v134_v7 = vperm.slane %v130_v6, %v305_v24 }
 0x1a2   :  { %v136_v9 = vmul.f32 %v134_v7, %v293_v0  ;;  %v137_v10 = vmul.f32 %v134_v7, %v295_v1 }
 0x1a7   :  { %v141_v8 = vpop.permute.xlu1 %140 }
 0x1a8   :  { %v145_v11 = vperm.slane %v141_v8, %v305_v24 }
 0x1aa   :  { %v147_v12 = vadd.f32 %v145_v11, %v136_v9  ;;  %v148_v13 = vadd.f32 %v145_v11, %v137_v10 }
 0x1ac   :  { %149 = vst [vmem:[#allocation5] sm:$0xff] %v147_v12 }
 0x1ad   :  { %150 = vst [vmem:[#allocation5 + $0x8] sm:$0xff] %v148_v13 }
 0x1ae   :  { %166 = dma.vmem_to_hbm [thread:$0]  %s159_s30, 256, %s161_s8, [#allocation4], %s250_s23, %s250_s23, %s251_s24  }
 0x1af   :  { %247 = dma.done.wait [#allocation4], 256  }
 0x1b0   :  { %248 = vsyncadd [#allocation4], 4294967040 }
 0x1b1   :  { %179 = vsyncpa [#allocation3], 1 }
 0x1b2   :  { %180 = vsyncpa [#allocation4], 1 }

</bundles_post_ra>
